<compile_context>
chip_gen: v6e
topology: v6e:2x2x1
jax: 0.10.0
libtpu: 0.0.40
codegen_flags: <defaults>
</compile_context>

<pallas_src>
import functools

import jax
import jax.numpy as jnp
from jax.experimental import pallas as pl
from jax.experimental.pallas import tpu as pltpu

LOGSTD_MIN = -20.0
LOGSTD_MAX = 2.0


def _cdiv(a, b):
    return -(-a // b)


def _round_up(x, m):
    return _cdiv(x, m) * m


def policy_kernel(x_ref, w1_ref, b12_ref, w2_ref, wh_ref, bh_ref, out_ref, *, n_out, sub):
    TB, OUTP = out_ref.shape
    n_sub = TB // sub

    # Lane mask selecting the log_std lanes of the fused head output
    # (lanes [0, n_out) = mean, [n_out, 2*n_out) = log_std, rest = zero pad).
    lane = jax.lax.broadcasted_iota(jnp.int32, (sub, OUTP), 1)
    is_logstd = (lane >= n_out) & (lane < 2 * n_out)

    b1 = b12_ref[0:1, :]          # (1, HID) f32
    b2 = b12_ref[1:2, :]          # (1, HID) f32
    bh = bh_ref[...]              # (1, OUTP) f32

    # Sub-block loop (<=256 rows) bounds vreg live ranges of h1/h2 when TB is large.
    @pl.loop(0, n_sub)
    def _(s):
        r = pl.multiple_of(s * sub, sub)
        x = x_ref[pl.ds(r, sub), :].astype(jnp.bfloat16)            # (sub, n_in)

        # hidden layer 1 + ReLU (bf16 MXU, f32 accumulate / bias / ReLU)
        h1 = jnp.dot(x, w1_ref[...], preferred_element_type=jnp.float32) + b1
        h1 = jnp.maximum(h1, 0.0).astype(jnp.bfloat16)              # (sub, HID)

        # hidden layer 2 + ReLU
        h2 = jnp.dot(h1, w2_ref[...], preferred_element_type=jnp.float32) + b2
        h2 = jnp.maximum(h2, 0.0).astype(jnp.bfloat16)              # (sub, HID)

        # fused heads: one lane-dense matmul for mean + log_std
        out = jnp.dot(h2, wh_ref[...], preferred_element_type=jnp.float32) + bh
        out = jnp.where(is_logstd, jnp.clip(out, LOGSTD_MIN, LOGSTD_MAX), out)

        out_ref[pl.ds(r, sub), :] = out.astype(out_ref.dtype)       # (sub, OUTP)


def _select_tile(B, block_b):
    """Grid-balanced batch tile; >=4 grid steps when B permits (v7x megacore)."""
    steps = _cdiv(B, block_b)
    steps = max(steps, min(4, _cdiv(B, 8)))
    TB = _round_up(_cdiv(B, steps), 8)
    if TB >= B:
        TB = B                      # single full-batch block (always a legal block shape)
    sub = min(TB, 256)              # per-sub-block row count inside the kernel
    TB = _round_up(TB, sub)
    return TB, sub


def policy_forward(x, params, *, block_b=1024):
    """x: [B, n_in] float32. Returns (mean, log_std), each [B, n_out] float32."""
    kp = params["kernel"]
    n_out = params["n_out"]
    w1, b12, w2, wh, bh = kp["w1"], kp["b12"], kp["w2"], kp["wh"], kp["bh"]
    n_in, HID = w1.shape
    OUTP = wh.shape[1]
    B = x.shape[0]
    assert x.shape[1] == n_in

    TB, sub = _select_tile(B, block_b)
    grid = (_cdiv(B, TB),)

    # VMEM budget: double-buffered weights + x/out tiles + intermediate headroom + slack.
    weight_bytes = sum(int(a.size * a.dtype.itemsize) for a in (w1, b12, w2, wh, bh))
    tile_bytes = TB * (n_in * 4 + OUTP * 4)
    est = 2 * (weight_bytes + tile_bytes) + 2 * TB * HID * 4 + (4 << 20)
    vmem_limit = int(min(64 << 20, max(32 << 20, est)))

    out = pl.pallas_call(
        functools.partial(policy_kernel, n_out=n_out, sub=sub),
        out_shape=jax.ShapeDtypeStruct((B, OUTP), jnp.float32),
        grid=grid,
        in_specs=[
            pl.BlockSpec((TB, n_in), lambda i: (i, 0)),    # x tile (pipelined, partial last tile ok)
            pl.BlockSpec((n_in, HID), lambda i: (0, 0)),   # W1 bf16 (VMEM-resident)
            pl.BlockSpec((2, HID), lambda i: (0, 0)),      # packed b1/b2 f32
            pl.BlockSpec((HID, HID), lambda i: (0, 0)),    # W2 bf16
            pl.BlockSpec((HID, OUTP), lambda i: (0, 0)),   # fused head weights bf16
            pl.BlockSpec((1, OUTP), lambda i: (0, 0)),     # fused head bias f32
        ],
        out_specs=pl.BlockSpec((TB, OUTP), lambda i: (i, 0)),
        compiler_params=pltpu.CompilerParams(
            dimension_semantics=("parallel",),             # shard batch across TCs on v7x
            vmem_limit_bytes=vmem_limit,
        ),
    )(x, w1, b12, w2, wh, bh)

    # NOTE: a fused downstream consumer (tanh squash / sampling) should take the
    # lane-dense padded slab `out` directly instead of these two slices.
    mean = out[:, :n_out]
    log_std = out[:, n_out:2 * n_out]
    return mean, log_std


def init_params(key, n_in, n_out, hidden):
    """Synthetic init mirroring the PyTorch module.

    Hidden layers: uniform(-1/sqrt(fan_in), 1/sqrt(fan_in)); heads: uniform(-0.003, 0.003).
    `logical` holds the unpadded f32 params (reference); `kernel` holds the
    lane-aligned, fused, bf16-weight versions fed to pallas_call.
    """
    ks = jax.random.split(key, 8)

    def uni(k, shape, bound):
        return jax.random.uniform(k, shape, jnp.float32, -bound, bound)

    b1w = 1.0 / (n_in ** 0.5)
    b2w = 1.0 / (hidden ** 0.5)
    logical = {
        "w1": uni(ks[0], (n_in, hidden), b1w),
        "b1": uni(ks[1], (hidden,), b1w),
        "w2": uni(ks[2], (hidden, hidden), b2w),
        "b2": uni(ks[3], (hidden,), b2w),
        "wm": uni(ks[4], (hidden, n_out), 0.003),
        "bm": uni(ks[5], (n_out,), 0.003),
        "ws": uni(ks[6], (hidden, n_out), 0.003),
        "bs": uni(ks[7], (n_out,), 0.003),
    }

    HID = _round_up(hidden, 128)       # lane-aligned hidden width (zero-padded cols/rows)
    OUTP = _round_up(2 * n_out, 128)   # lane-dense fused head output width

    w1 = (jnp.zeros((n_in, HID), jnp.float32)
          .at[:, :hidden].set(logical["w1"])).astype(jnp.bfloat16)
    b12 = (jnp.zeros((2, HID), jnp.float32)
           .at[0, :hidden].set(logical["b1"])
           .at[1, :hidden].set(logical["b2"]))
    w2 = (jnp.zeros((HID, HID), jnp.float32)
          .at[:hidden, :hidden].set(logical["w2"])).astype(jnp.bfloat16)
    wh = (jnp.zeros((HID, OUTP), jnp.float32)
          .at[:hidden, :n_out].set(logical["wm"])
          .at[:hidden, n_out:2 * n_out].set(logical["ws"])).astype(jnp.bfloat16)
    bh = (jnp.zeros((1, OUTP), jnp.float32)
          .at[0, :n_out].set(logical["bm"])
          .at[0, n_out:2 * n_out].set(logical["bs"]))

    return {
        "logical": logical,
        "kernel": {"w1": w1, "b12": b12, "w2": w2, "wh": wh, "bh": bh},
        "n_in": n_in,
        "n_out": n_out,
        "hidden": hidden,
    }


def reference_forward_bf16(x, params):
    """Plain-JAX mirror of the kernel math (bf16-rounded weights, f32 accumulate)."""
    kp = params["kernel"]
    n_out = params["n_out"]
    f32 = lambda a: a.astype(jnp.float32)
    bf = lambda a: a.astype(jnp.bfloat16)
    xq = f32(bf(x))
    h1 = jnp.maximum(xq @ f32(kp["w1"]) + kp["b12"][0], 0.0)
    h2 = jnp.maximum(f32(bf(h1)) @ f32(kp["w2"]) + kp["b12"][1], 0.0)
    out = f32(bf(h2)) @ f32(kp["wh"]) + kp["bh"][0]
    mean = out[:, :n_out]
    log_std = jnp.clip(out[:, n_out:2 * n_out], LOGSTD_MIN, LOGSTD_MAX)
    return mean, log_std


def reference_forward_f32(x, params):
    """Original full-f32 module semantics."""
    p = params["logical"]
    h1 = jnp.maximum(x @ p["w1"] + p["b1"], 0.0)
    h2 = jnp.maximum(h1 @ p["w2"] + p["b2"], 0.0)
    mean = h2 @ p["wm"] + p["bm"]
    log_std = jnp.clip(h2 @ p["ws"] + p["bs"], LOGSTD_MIN, LOGSTD_MAX)
    return mean, log_std


if __name__ == "__main__":
    # FetchPush-v1: achieved_goal dim 3 + observation dim 25 -> n_in = 28,
    # action dim -> n_out = 4.  hidden=256 is the module default; small batch.
    n_in, n_out, hidden, batch = 28, 4, 256, 64

    key = jax.random.PRNGKey(0)
    pkey, xkey = jax.random.split(key)
    params = init_params(pkey, n_in, n_out, hidden)
    x = jax.random.normal(xkey, (batch, n_in), jnp.float32)

    mean, log_std = policy_forward(x, params)
    jax.block_until_ready((mean, log_std))

    # tight check against a plain-JAX mirror of the kernel math (bf16 weights)
    ref_mean, ref_log_std = reference_forward_bf16(x, params)
    # loose check against the original full-f32 module semantics
    f32_mean, f32_log_std = reference_forward_f32(x, params)

    assert mean.shape == (batch, n_out) and log_std.shape == (batch, n_out)
    assert jnp.allclose(mean, ref_mean, atol=2e-3, rtol=2e-3)
    assert jnp.allclose(log_std, ref_log_std, atol=2e-3, rtol=2e-3)
    assert jnp.allclose(mean, f32_mean, atol=5e-2, rtol=5e-2)
    assert jnp.allclose(log_std, f32_log_std, atol=5e-2, rtol=5e-2)
    assert bool(jnp.all(log_std >= LOGSTD_MIN)) and bool(jnp.all(log_std <= LOGSTD_MAX))

    print("KERNEL_OK")
</pallas_src>

<mosaic_0001>
module attributes {stable_mosaic.version = 11 : i64} {
  func.func @policy_kernel(%arg0: i32, %arg1: memref<16x28xf32, #tpu.memory_space<vmem>>, %arg2: memref<28x256xbf16, #tpu.memory_space<vmem>>, %arg3: memref<2x256xf32, #tpu.memory_space<vmem>>, %arg4: memref<256x256xbf16, #tpu.memory_space<vmem>>, %arg5: memref<256x128xbf16, #tpu.memory_space<vmem>>, %arg6: memref<1x128xf32, #tpu.memory_space<vmem>>, %arg7: memref<16x128xf32, #tpu.memory_space<vmem>>) attributes {dimension_semantics = [#tpu.dimension_semantics<parallel>], iteration_bounds = array<i64: 4>, scalar_prefetch = 0 : i64, scratch_operands = 0 : i64, tpu.core_type = #tpu.core_type<tc>, window_params = [{transform_indices = @transform_0, window_bounds = array<i64: 16, 28>}, {pipeline_mode = #tpu.pipeline_mode<synchronous>, transform_indices = @transform_1, window_bounds = array<i64: 28, 256>}, {pipeline_mode = #tpu.pipeline_mode<synchronous>, transform_indices = @transform_2, window_bounds = array<i64: 2, 256>}, {pipeline_mode = #tpu.pipeline_mode<synchronous>, transform_indices = @transform_3, window_bounds = array<i64: 256, 256>}, {pipeline_mode = #tpu.pipeline_mode<synchronous>, transform_indices = @transform_4, window_bounds = array<i64: 256, 128>}, {pipeline_mode = #tpu.pipeline_mode<synchronous>, transform_indices = @transform_5, window_bounds = array<i64: 1, 128>}, {transform_indices = @transform_6, window_bounds = array<i64: 16, 128>}]} {
    %0 = tpu.iota {dimensions = array<i32: 1>} : vector<16x128xi32>
    %c4_i32 = arith.constant 4 : i32
    %1 = vector.broadcast %c4_i32 : i32 to vector<16x128xi32>
    %2 = arith.cmpi sge, %0, %1 : vector<16x128xi32>
    %c8_i32 = arith.constant 8 : i32
    %3 = vector.broadcast %c8_i32 : i32 to vector<16x128xi32>
    %4 = arith.cmpi slt, %0, %3 : vector<16x128xi32>
    %5 = arith.andi %2, %4 : vector<16x128xi1>
    %c0 = arith.constant 0 : index
    %c0_0 = arith.constant 0 : index
    %6 = vector.load %arg3[%c0, %c0_0] : memref<2x256xf32, #tpu.memory_space<vmem>>, vector<1x256xf32>
    %c1 = arith.constant 1 : index
    %c0_1 = arith.constant 0 : index
    %7 = vector.load %arg3[%c1, %c0_1] : memref<2x256xf32, #tpu.memory_space<vmem>>, vector<1x256xf32>
    %c0_2 = arith.constant 0 : index
    %c0_3 = arith.constant 0 : index
    %8 = vector.load %arg6[%c0_2, %c0_3] : memref<1x128xf32, #tpu.memory_space<vmem>>, vector<1x128xf32>
    %c0_i32 = arith.constant 0 : i32
    %c1_i32 = arith.constant 1 : i32
    %9 = arith.muli %c0_i32, %c1_i32 : i32
    %c0_i32_4 = arith.constant 0 : i32
    %10 = arith.addi %c0_i32_4, %9 : i32
    %c16_i32 = arith.constant 16 : i32
    %11 = arith.muli %10, %c16_i32 : i32
    %12 = tpu.assume_multiple %11, 16 : i32
    %13 = arith.index_cast %12 : i32 to index
    %c0_5 = arith.constant 0 : index
    %14 = vector.load %arg1[%13, %c0_5] : memref<16x28xf32, #tpu.memory_space<vmem>>, vector<16x28xf32>
    %15 = arith.truncf %14 : vector<16x28xf32> to vector<16x28xbf16>
    %c0_6 = arith.constant 0 : index
    %c0_7 = arith.constant 0 : index
    %16 = vector.load %arg2[%c0_6, %c0_7] : memref<28x256xbf16, #tpu.memory_space<vmem>>, vector<28x256xbf16>
    %cst = arith.constant dense<0.000000e+00> : vector<16x256xf32>
    %17 = tpu.matmul %15, %16, %cst {dimension_numbers = #tpu.dot_dimension_numbers<[1], [0], [0], [1], [0, 0, 1, 1], [], []>} : vector<16x28xbf16>, vector<28x256xbf16>, vector<16x256xf32> -> vector<16x256xf32>
    %18 = vector.broadcast %6 : vector<1x256xf32> to vector<16x256xf32>
    %19 = arith.addf %17, %18 : vector<16x256xf32>
    %cst_8 = arith.constant 0.000000e+00 : f32
    %20 = vector.broadcast %cst_8 : f32 to vector<16x256xf32>
    %21 = arith.maximumf %19, %20 : vector<16x256xf32>
    %22 = arith.truncf %21 : vector<16x256xf32> to vector<16x256xbf16>
    %c0_9 = arith.constant 0 : index
    %c0_10 = arith.constant 0 : index
    %23 = vector.load %arg4[%c0_9, %c0_10] : memref<256x256xbf16, #tpu.memory_space<vmem>>, vector<256x256xbf16>
    %cst_11 = arith.constant dense<0.000000e+00> : vector<16x256xf32>
    %24 = tpu.matmul %22, %23, %cst_11 {dimension_numbers = #tpu.dot_dimension_numbers<[1], [0], [0], [1], [0, 0, 1, 1], [], []>} : vector<16x256xbf16>, vector<256x256xbf16>, vector<16x256xf32> -> vector<16x256xf32>
    %25 = vector.broadcast %7 : vector<1x256xf32> to vector<16x256xf32>
    %26 = arith.addf %24, %25 : vector<16x256xf32>
    %cst_12 = arith.constant 0.000000e+00 : f32
    %27 = vector.broadcast %cst_12 : f32 to vector<16x256xf32>
    %28 = arith.maximumf %26, %27 : vector<16x256xf32>
    %29 = arith.truncf %28 : vector<16x256xf32> to vector<16x256xbf16>
    %c0_13 = arith.constant 0 : index
    %c0_14 = arith.constant 0 : index
    %30 = vector.load %arg5[%c0_13, %c0_14] : memref<256x128xbf16, #tpu.memory_space<vmem>>, vector<256x128xbf16>
    %cst_15 = arith.constant dense<0.000000e+00> : vector<16x128xf32>
    %31 = tpu.matmul %29, %30, %cst_15 {dimension_numbers = #tpu.dot_dimension_numbers<[1], [0], [0], [1], [0, 0, 1, 1], [], []>} : vector<16x256xbf16>, vector<256x128xbf16>, vector<16x128xf32> -> vector<16x128xf32>
    %32 = vector.broadcast %8 : vector<1x128xf32> to vector<16x128xf32>
    %33 = arith.addf %31, %32 : vector<16x128xf32>
    %cst_16 = arith.constant -2.000000e+01 : f32
    %cst_17 = arith.constant 2.000000e+00 : f32
    %34 = vector.broadcast %cst_16 : f32 to vector<16x128xf32>
    %35 = arith.maximumf %34, %33 : vector<16x128xf32>
    %36 = vector.broadcast %cst_17 : f32 to vector<16x128xf32>
    %37 = arith.minimumf %36, %35 : vector<16x128xf32>
    %38 = arith.select %5, %37, %33 : vector<16x128xi1>, vector<16x128xf32>
    %39 = arith.index_cast %12 : i32 to index
    %c0_18 = arith.constant 0 : index
    %40 = vector.load %arg7[%39, %c0_18] : memref<16x128xf32, #tpu.memory_space<vmem>>, vector<16x128xf32>
    tpu.vector_store %arg7[%39, %c0_18], %38 {strides = array<i32>} : memref<16x128xf32, #tpu.memory_space<vmem>>, vector<16x128xf32>,
    %c1_i32_19 = arith.constant 1 : i32
    return
  }
  func.func @transform_0(%arg0: i32) -> (i32, i32) {
    %c0_i32 = arith.constant 0 : i32
    %c0_i32_0 = arith.constant 0 : i32
    return %arg0, %c0_i32 : i32, i32
  }
  func.func @transform_1(%arg0: i32) -> (i32, i32) {
    %c0_i32 = arith.constant 0 : i32
    %c0_i32_0 = arith.constant 0 : i32
    %c0_i32_1 = arith.constant 0 : i32
    return %c0_i32, %c0_i32_0 : i32, i32
  }
  func.func @transform_2(%arg0: i32) -> (i32, i32) {
    %c0_i32 = arith.constant 0 : i32
    %c0_i32_0 = arith.constant 0 : i32
    %c0_i32_1 = arith.constant 0 : i32
    return %c0_i32, %c0_i32_0 : i32, i32
  }
  func.func @transform_3(%arg0: i32) -> (i32, i32) {
    %c0_i32 = arith.constant 0 : i32
    %c0_i32_0 = arith.constant 0 : i32
    %c0_i32_1 = arith.constant 0 : i32
    return %c0_i32, %c0_i32_0 : i32, i32
  }
  func.func @transform_4(%arg0: i32) -> (i32, i32) {
    %c0_i32 = arith.constant 0 : i32
    %c0_i32_0 = arith.constant 0 : i32
    %c0_i32_1 = arith.constant 0 : i32
    return %c0_i32, %c0_i32_0 : i32, i32
  }
  func.func @transform_5(%arg0: i32) -> (i32, i32) {
    %c0_i32 = arith.constant 0 : i32
    %c0_i32_0 = arith.constant 0 : i32
    %c0_i32_1 = arith.constant 0 : i32
    return %c0_i32, %c0_i32_0 : i32, i32
  }
  func.func @transform_6(%arg0: i32) -> (i32, i32) {
    %c0_i32 = arith.constant 0 : i32
    %c0_i32_0 = arith.constant 0 : i32
    return %arg0, %c0_i32 : i32, i32
  }
}

</mosaic_0001>

<bundles_post_ra>
// kernel: tpu_custom_call.1
= control target key start
LH: loop header
LB: loop body
LE: loop exit
PB: predicated region body
PF: predicated region fallthrough
CT: control target
= control target key end

     0   :  { %11 = vsyncpa [#allocation3], 0  ;;  %s1484_s0 = inlined_call_operand.vmem [shape: f32[64,28], index: 0, kind: input, shape index: {}]   ;;  %s1485_s1 = inlined_call_operand.vmem [shape: bf16[28,256], index: 1, kind: input, shape index: {}]   ;;  %s1486_s2 = inlined_call_operand.vmem [shape: f32[2,256], index: 2, kind: input, shape index: {}]   ;;  %s1487_s3 = inlined_call_operand.hbm [shape: bf16[256,256], index: 3, kind: input, shape index: {}]   ;;  %s1488_s4 = inlined_call_operand.hbm [shape: bf16[256,128], index: 4, kind: input, shape index: {}]   ;;  %s1489_s5 = inlined_call_operand.vmem [shape: f32[1,128], index: 5, kind: input, shape index: {}]   ;;  %s1490_s6 = inlined_call_operand.hbm [shape: f32[64,128], index: 6, kind: output, shape index: {}]  }
   0x1   :  { %12 = vsyncpa [#allocation6], 0 }
   0x2   :  { %13 = vsyncpa [#allocation4], 0 }
   0x3   :  { %15 = vsyncpa [#allocation4 + $0x1], 0  ;;  %s1321_s21 = smov 0   ;;  %s1323_s22 = smov 0  }
   0x4   :  { %s1325_s23 = smov 0   ;;  %s1327_s24 = smov 0  }
   0x5 LB: > { %s1342_s25 = sadd.s32 4294967295, %s1274_s24   ;;  %s922_s26 = sadd.s32 4294967294, %s1274_s24   ;;  %s1274_s24 = sphi %s1327_s24, %s1504_s24   ;;  %s1270_s23 = sphi %s1325_s23, %s1503_s23   ;;  %s1266_s22 = sphi %s1323_s22, %s1502_s22   ;;  %s1262_s21 = sphi %s1321_s21, %s1501_s21  }
   0x6   : > { %s1346_s27 = sadd.s32 1, %s1274_s24   ;;  %s159_s28 = sadd.s32 1, %s1270_s23 }
   0x7   : > { %s156_s29 = ssub.s32 %s1274_s24, %s1346_s27  ;;  %p169_p0 = scmp.ne.s32.totalorder %s1270_s23, %s1266_s22 }
   0x8   : > { %p157_p1 = scmp.eq.s32.totalorder %s156_s29, 0  ;;  %p170_p2 = scmp.eq.s32.totalorder %s1342_s25, 3 }
   0x9   : > { %p175_p3 = scmp.ne.s32.totalorder %s1266_s22, %s1262_s21  ;;  %p176_p4 = scmp.eq.s32.totalorder %s922_s26, 3 }
   0xa   : > { %s1357_s30 = scalar_select %p157_p1, %s1270_s23, %s159_s28  }
   0xb   : > { %p1359_p5 = por %p170_p2, %p169_p0  ;;  %p1363_p6 = por %p176_p4, %p175_p3 }
   0xc   : > { %p923_p7 = scmp.ge.s32.totalorder %s1274_s24, 1  ;;  %p183_p8 = scmp.lt.s32.totalorder %s1274_s24, 5 }
   0xd   : > { %s1493_s8 = scalar_select %p1363_p6, 1, 0 }
   0xe   : > { %p1491_p9 = scmp.eq.s32.totalorder %s1342_s25, 0  ;;  %p1370_p10 = pnand %p923_p7, %p183_p8 }
   0xf   : > { %s1276_s10 = smov [#allocation2]   ;;  %s1277_s13 = smov [#allocation5]  }
  0x10   : > { %s201_s11 = sshll.u32 %s1276_s10, 4  ;;  %p1027_p11 = pneg %p1370_p10  ;;  %s202_s11 = int_to_ptr.vmem [resolvable:$true] %s201_s11 }
  0x11   : > { %s214_s14 = sshll.u32 %s1277_s13, 4  ;;  %s1165_s15 = scalar_lea.vmem %s202_s11, 4096  ;;  %s215_s14 = int_to_ptr.vmem [resolvable:$true] %s214_s14 }
  0x12   : > { %p1378_p12 = pnand %p1491_p9, %p1027_p11  ;;  %p1166_p0 = scmp.ne.s32.totalorder %s202_s11, %s1165_s15 }
  0x13   : > { %p1173_p3 = scmp.lt.s32.totalorder %s202_s11, %s202_s11  ;;  %p1174_p4 = scmp.lt.s32.totalorder %s1165_s15, %s1165_s15 }
  0x14   : > { %p1156_p13 = pneg %p1378_p12 }
  0x15   : > { %p1175_p7 = por %p1174_p4, %p1173_p3 }
  0x16   : > { %p1168_p1 = pnand %p1166_p0, %p1156_p13 }
  0x18   : > { %p1169_p2 = pneg %p1168_p1 }
  0x1a   : > { %p1176_p8 = pnand %p1175_p7, %p1169_p2 }
  0x1c   : > { %1179 = shalt.err (!%p1176_p8)
}
  0x1d   : > { %s1278_s16 = smov 128   ;;  %s1279_s17 = smov 8  }
  0x1e   : > { %1030 = dma.hbm_to_vmem [thread:$0]  (!%p1378_p12), %s1487_s3, 4096, %s202_s11, [#allocation3], %s1278_s16, %s1278_s16, %s1279_s17  }
  0x1f   : > { %s1191_s20 = scalar_lea.vmem %s215_s14, 2048  ;;  %p1199_p9 = scmp.lt.s32.totalorder %s215_s14, %s215_s14 }
  0x20   : > { %p1192_p11 = scmp.ne.s32.totalorder %s215_s14, %s1191_s20  ;;  %p1200_p6 = scmp.lt.s32.totalorder %s1191_s20, %s1191_s20 }
  0x22   : > { %p1194_p0 = pnand %p1192_p11, %p1156_p13  ;;  %p1201_p3 = por %p1200_p6, %p1199_p9 }
  0x24   : > { %p1195_p1 = pneg %p1194_p0 }
  0x26   : > { %p1202_p2 = pnand %p1201_p3, %p1195_p1 }
  0x28   : > { %1205 = shalt.err (!%p1202_p2)
}
  0x29   : > { %s1280_s26 = smov 64   ;;  %s1281_s28 = smov 4  }
  0x2a   : > { %1033 = dma.hbm_to_vmem [thread:$0]  (!%p1378_p12), %s1488_s4, 2048, %s215_s14, [#allocation6], %s1280_s26, %s1280_s26, %s1281_s28  }
  0x2b   : > { %242 = sbr.rel (%p1370_p10) target bundleno = 696 (0x2b8), region = 44  ;;  %p1496_p4 = scmp.eq.s32.totalorder (!%p1370_p10), %s1342_s25, 0 }
  0x30   : > { %1249 = dma.done.wait (%p1496_p4), [#allocation3], 4096   ;;  %p1497_p13 = pmov %p1496_p4 }
  0x31   : > { %p1498_p6 = pmov %p1496_p4 }
  0x32   : > { %1251 = vsyncadd (%p1497_p13), [#allocation3], 4294963200 }
  0x33   : > { %1253 = dma.done.wait (%p1498_p6), [#allocation6], 2048   ;;  %p1499_p9 = pmov %p1496_p4 }
  0x34   : > { %s931_s11 = sshll.u32 %s1342_s25, 1  ;;  %v1282_v0 = vmov 0   ;;  %vm333_vm0 = vcmask 1045504   ;;  %v1084_v1 = vld [vmem:[%s1485_s1 + $0x14] ss:$8 sps:$4 sm:$0x3f]   ;;  %v284_v51 = vlaneseq }
  0x35   : > { %1255 = vsyncadd (%p1499_p9), [#allocation6], 4294965248  ;;  %372 = vmatprep.mubr.bf16.mxu0 %v1282_v0  ;;  %p277_p12 = scmp.lt.s32.totalorder %s931_s11, 7  ;;  %v1086_v2 = vld [vmem:[%s1485_s1 + $0x10] ss:$8 sps:$4 sm:$0x3f]   ;;  %938 = vmatprep.subr.msk.bf16.mxu0 %vm333_vm0, %v1084_v1 }
  0x36   : > { %v1087_v3 = vld [vmem:[%s1485_s1 + $0x4] ss:$8 sps:$4 sm:$0xff]   ;;  %v1089_v4 = vld [vmem:[%s1485_s1] ss:$8 sps:$4 sm:$0xff]   ;;  %v335_v6 = vsel %vm333_vm0, %v1086_v2, 0  ;;  %vm329_vm1 = vcmask 228352  }
  0x37   : > { %s1506_s11 = smov (!%p277_p12, %s931_s11), 7  ;;  %353 = vmatpush1.bf16.msra.mxu0 %v335_v6  ;;  %v1090_v8 = vld [vmem:[#allocation2 + $0x74] ss:$8 sps:$4 sm:$0xff]   ;;  %v1092_v9 = vld [vmem:[#allocation2 + $0x70] ss:$8 sps:$4 sm:$0xff]   ;;  %v1142_v45 = vld [vmem:[#allocation5 + $0x68] sm:$0xff]  }
  0x38   : > { %s932_s9 = sshll.u32 %s1506_s11, 3  ;;  %354 = vmatprep.subr.bf16.mxu0 %v1087_v3  ;;  %v1093_v10 = vld [vmem:[#allocation2 + $0x64] ss:$8 sps:$4 sm:$0xff]   ;;  %592 = vmatprep.subr.bf16.mxu1 %v1090_v8  ;;  %v1095_v12 = vld [vmem:[#allocation2 + $0x60] ss:$8 sps:$4 sm:$0xff]   ;;  %v1138_v41 = vld [vmem:[#allocation5 + $0x78] sm:$0xff]  }
  0x39   : > { %s280_s14 = scalar_lea.vmem %s1484_s0, %s932_s9  ;;  %593 = vmatpush1.bf16.msra.mxu1 %v1092_v9  ;;  %v1096_v13 = vld [vmem:[#allocation2 + $0x54] ss:$8 sps:$4 sm:$0xff]   ;;  %v1098_v14 = vld [vmem:[#allocation2 + $0x50] ss:$8 sps:$4 sm:$0xff]   ;;  %v1099_v15 = vld [vmem:[#allocation2 + $0x44] ss:$8 sps:$4 sm:$0xff]  }
  0x3a   : > { %v293_v5 = vld [vmem:[%s280_s14] sm:$0xff]  ;;  %v294_v7 = vld [vmem:[%s280_s14 + $0x8] sm:$0xff]  ;;  %594 = vmatprep.subr.bf16.mxu1 %v1093_v10  ;;  %v1102_v17 = vld [vmem:[#allocation2 + $0x34] ss:$8 sps:$4 sm:$0xff]   ;;  %v302_v52 = vshrl.u32 %v284_v51, 7  ;;  %s273_s14 = sand.u32 1, %s1266_s22  }
  0x3b   : > { %v295_v11 = vpack.c.bf16 %v294_v7, %v293_v5  ;;  %355 = vmatpush1.bf16.msra.mxu0 %v1089_v4  ;;  %v1101_v16 = vld [vmem:[#allocation2 + $0x40] ss:$8 sps:$4 sm:$0xff]   ;;  %v1104_v18 = vld [vmem:[#allocation2 + $0x30] ss:$8 sps:$4 sm:$0xff]   ;;  %v1105_v19 = vld [vmem:[#allocation2 + $0x24] ss:$8 sps:$4 sm:$0xff]  }
  0x3c   : > { %v1107_v20 = vld [vmem:[#allocation2 + $0x20] ss:$8 sps:$4 sm:$0xff]   ;;  %v1108_v21 = vld [vmem:[#allocation2 + $0x14] ss:$8 sps:$4 sm:$0xff]   ;;  %v1110_v22 = vld [vmem:[#allocation2 + $0x10] ss:$8 sps:$4 sm:$0xff]   ;;  %995 = vmatprep.subr.bf16.mxu0 %v1138_v41 }
  0x3d   : > { %595 = vmatpush1.bf16.msra.mxu1 %v1095_v12  ;;  %v1111_v23 = vld [vmem:[#allocation2 + $0x4] ss:$8 sps:$4 sm:$0xff]   ;;  %v1113_v24 = vld [vmem:[#allocation2] ss:$8 sps:$4 sm:$0xff]   ;;  %v1114_v25 = vld [vmem:[#allocation2 + $0xf4] ss:$8 sps:$4 sm:$0xff]  }
  0x3e   : > { %939 = vmatmul.mubr.msk.bf16.vlgmr.msra.gmra.mxu0 %vm329_vm1, %v295_v11  ;;  %596 = vmatprep.subr.bf16.mxu1 %v1096_v13  ;;  %v1116_v26 = vld [vmem:[#allocation2 + $0xf0] ss:$8 sps:$4 sm:$0xff]   ;;  %v1117_v27 = vld [vmem:[#allocation2 + $0xe4] ss:$8 sps:$4 sm:$0xff]   ;;  %v1119_v28 = vld [vmem:[#allocation2 + $0xe0] ss:$8 sps:$4 sm:$0xff]  }
  0x3f   : > { %v1120_v29 = vld [vmem:[#allocation2 + $0xd4] ss:$8 sps:$4 sm:$0xff]   ;;  %v1122_v30 = vld [vmem:[#allocation2 + $0xd0] ss:$8 sps:$4 sm:$0xff]   ;;  %v1123_v31 = vld [vmem:[#allocation2 + $0xc4] ss:$8 sps:$4 sm:$0xff]  }
  0x40   : > { %v1125_v32 = vld [vmem:[#allocation2 + $0xc0] ss:$8 sps:$4 sm:$0xff]   ;;  %v1126_v33 = vld [vmem:[#allocation2 + $0xb4] ss:$8 sps:$4 sm:$0xff]   ;;  %v1128_v34 = vld [vmem:[#allocation2 + $0xb0] ss:$8 sps:$4 sm:$0xff]  }
  0x41   : > { %597 = vmatpush1.bf16.msra.mxu1 %v1098_v14  ;;  %v1129_v35 = vld [vmem:[#allocation2 + $0xa4] ss:$8 sps:$4 sm:$0xff]   ;;  %v1131_v36 = vld [vmem:[#allocation2 + $0xa0] ss:$8 sps:$4 sm:$0xff]   ;;  %v1132_v37 = vld [vmem:[#allocation2 + $0x94] ss:$8 sps:$4 sm:$0xff]  }
  0x42   : > { %598 = vmatprep.subr.bf16.mxu1 %v1099_v15  ;;  %v1134_v38 = vld [vmem:[#allocation2 + $0x90] ss:$8 sps:$4 sm:$0xff]   ;;  %v1135_v39 = vld [vmem:[#allocation2 + $0x84] ss:$8 sps:$4 sm:$0xff]   ;;  %v1137_v40 = vld [vmem:[#allocation2 + $0x80] ss:$8 sps:$4 sm:$0xff]  }
  0x43   : > { %v1139_v42 = vld [vmem:[#allocation5 + $0x38] sm:$0xff]   ;;  %v1140_v43 = vld [vmem:[#allocation5 + $0x70] sm:$0xff]   ;;  %v1143_v46 = vld [vmem:[#allocation5 + $0x28] sm:$0xff]   ;;  %v307_v53 = vsub.s32 1, %v302_v52  ;;  %v303_v54 = vsub.s32 0, %v302_v52  ;;  %s930_s15 = sshll.u32 %s273_s14, 4 }
  0x44   : > { %996 = vmatpush3.bf16.msra.mxu0 %v1139_v42  ;;  %v1141_v44 = vld [vmem:[#allocation5 + $0x30] sm:$0xff]   ;;  %v1144_v47 = vld [vmem:[#allocation5 + $0x60] sm:$0xff]   ;;  %v1146_v49 = vld [vmem:[#allocation5 + $0x58] sm:$0xff]   ;;  %s275_s16 = scalar_lea.vmem [#allocation7], %s930_s15  ;;  %s994_s18 = sshll.u32 %s1342_s25, 8 }
  0x45   : > { %599 = vmatpush1.bf16.msra.mxu1 %v1101_v16  ;;  %997 = vmatprep.subr.bf16.mxu0 %v1140_v43  ;;  %v1145_v48 = vld [vmem:[#allocation5 + $0x20] sm:$0xff]   ;;  %v1147_v50 = vld [vmem:[#allocation5 + $0x18] sm:$0xff]   ;;  %v1148_v8 = vld [vmem:[#allocation5 + $0x50] sm:$0xff]   ;;  %s838_s17 = sshll.u32 %s275_s16, 4  ;;  %s1442_s26 = scalar_lea.hbm %s1490_s6, %s994_s18  ;;  %s1437_s17 = int_to_ptr.vmem [resolvable:$true] %s838_s17 }
  0x46   : > { %600 = vmatprep.subr.bf16.mxu1 %v1102_v17  ;;  %v289_v55 = vld [vmem:[%s1486_s2] ss:$2 sm:$0x3]  ;;  %v1149_v9 = vld [vmem:[#allocation5 + $0x10] sm:$0xff]   ;;  %v1150_v10 = vld [vmem:[#allocation5 + $0x48] sm:$0xff]   ;;  %s1444_s28 = scalar_lea.sflag [#allocation4], %s273_s14 }
  0x47   : > { %v308_v57 = vrot.slane %v289_v55, %v307_v53  ;;  %v304_v58 = vrot.slane %v289_v55, %v303_v54  ;;  %v1151_v11 = vld [vmem:[#allocation5 + $0x8] sm:$0xff]   ;;  %v1152_v12 = vld [vmem:[#allocation5 + $0x40] sm:$0xff]   ;;  %s1206_s29 = scalar_lea.vmem %s1437_s17, 256  ;;  %s1283_s25 = smov [#allocation7]  }
  0x48   : > { %998 = vmatpush3.bf16.msra.mxu0 %v1141_v44  ;;  %v1153_v13 = vld [vmem:[#allocation5] sm:$0xff]   ;;  %p1207_p10 = scmp.ne.s32.totalorder %s1437_s17, %s1206_s29  ;;  %s1210_s10 = sshll.u32 %s1283_s25, 4  ;;  %s1211_s10 = int_to_ptr.vmem [resolvable:$false] %s1210_s10 }
  0x49   : > { %601 = vmatpush1.bf16.msra.mxu1 %v1104_v18  ;;  %999 = vmatprep.subr.bf16.mxu0 %v1142_v45  ;;  %v933_v14 = vld [vmem:[%s1486_s2 + $0x1] ss:$2 sm:$0x3]  ;;  %s1212_s11 = scalar_lea.vmem %s1211_s10, 512  ;;  %p1213_p11 = scmp.lt.s32.totalorder %s1437_s17, %s1211_s10 }
  0x4a   : > { %602 = vmatprep.subr.bf16.mxu1 %v1105_v19  ;;  %v429_v16 = vrot.slane %v933_v14, %v307_v53  ;;  %v425_v17 = vrot.slane %v933_v14, %v303_v54  ;;  %p1208_p7 = pnand %p1207_p10, %p1359_p5  ;;  %p1214_p0 = scmp.lt.s32.totalorder %s1212_s11, %s1206_s29 }
  0x4c   : > { %1000 = vmatpush3.bf16.msra.mxu0 %v1143_v46  ;;  %p1209_p8 = pneg %p1208_p7  ;;  %p1215_p1 = por %p1214_p0, %p1213_p11 }
  0x4d   : > { %603 = vmatpush1.bf16.msra.mxu1 %v1107_v20  ;;  %1001 = vmatprep.subr.bf16.mxu0 %v1144_v47 }
  0x4e   : > { %604 = vmatprep.subr.bf16.mxu1 %v1108_v21  ;;  %p1216_p3 = pnand %p1215_p1, %p1209_p8 }
  0x50   : > { %1002 = vmatpush3.bf16.msra.mxu0 %v1145_v48 }
  0x51   : > { %605 = vmatpush1.bf16.msra.mxu1 %v1110_v22  ;;  %1003 = vmatprep.subr.bf16.mxu0 %v1146_v49 }
  0x52   : > { %606 = vmatprep.subr.bf16.mxu1 %v1111_v23 }
  0x54   : > { %1004 = vmatpush3.bf16.msra.mxu0 %v1147_v50 }
  0x55   : > { %607 = vmatpush1.bf16.msra.mxu1 %v1113_v24  ;;  %1005 = vmatprep.subr.bf16.mxu0 %v1148_v8 }
  0x56   : > { %608 = vmatprep.subr.bf16.mxu1 %v1114_v25 }
  0x58   : > { %1006 = vmatpush3.bf16.msra.mxu0 %v1149_v9 }
  0x59   : > { %609 = vmatpush2.bf16.msra.mxu1 %v1116_v26  ;;  %1007 = vmatprep.subr.bf16.mxu0 %v1150_v10 }
  0x5a   : > { %610 = vmatprep.subr.bf16.mxu1 %v1117_v27 }
  0x5c   : > { %1008 = vmatpush3.bf16.msra.mxu0 %v1151_v11 }
  0x5d   : > { %611 = vmatpush2.bf16.msra.mxu1 %v1119_v28  ;;  %1009 = vmatprep.subr.bf16.mxu0 %v1152_v12 }
  0x5e   : > { %612 = vmatprep.subr.bf16.mxu1 %v1120_v29 }
  0x60   : > { %1010 = vmatpush3.bf16.msra.mxu0 %v1153_v13 }
  0x61   : > { %613 = vmatpush2.bf16.msra.mxu1 %v1122_v30 }
  0x62   : > { %614 = vmatprep.subr.bf16.mxu1 %v1123_v31 }
  0x65   : > { %615 = vmatpush2.bf16.msra.mxu1 %v1125_v32  ;;  %v285_v32 = vand.u32 127, %v284_v51 }
  0x66   : > { %616 = vmatprep.subr.bf16.mxu1 %v1126_v33  ;;  %v972_v33 = vld [vmem:[%s1489_s5] ss:$0 sm:$0xff] }
  0x67   : > { %vm286_vm2 = vcmp.ge.s32.totalorder %v285_v32, 4  ;;  %vm287_vm3 = vcmp.lt.s32.totalorder %v285_v32, 8 }
  0x68   : > { %vm288_vm4 = vmand %vm286_vm2, %vm287_vm3 }
  0x69   : > { %617 = vmatpush2.bf16.msra.mxu1 %v1128_v34 }
  0x6a   : > { %618 = vmatprep.subr.bf16.mxu1 %v1129_v35 }
  0x6d   : > { %619 = vmatpush2.bf16.msra.mxu1 %v1131_v36 }
  0x6e   : > { %620 = vmatprep.subr.bf16.mxu1 %v1132_v37 }
  0x71   : > { %621 = vmatpush2.bf16.msra.mxu1 %v1134_v38 }
  0x72   : > { %622 = vmatprep.subr.bf16.mxu1 %v1135_v39 }
  0x75   : > { %623 = vmatpush2.bf16.msra.mxu1 %v1137_v40 }
  0xfe   : > { %v374_v56 = vpop.f32.mrf.mxu0 }
  0xff   : > { %v375_v63 = vadd.f32 %v374_v56, %v304_v58 }
 0x100   : > { %v376_v59 = vpop.f32.mrf.mxu0 }
 0x101   : > { %v377_v61 = vadd.f32 %v376_v59, %v308_v57  ;;  %v383_v5 = vmax.f32 %v375_v63, 0.0 }
 0x102   : > { %v378_v60 = vpop.f32.mrf.mxu0 }
 0x103   : > { %v379_v62 = vadd.f32 %v378_v60, %v304_v58  ;;  %v384_v3 = vmax.f32 %v377_v61, 0.0 }
 0x104   : > { %v380_v0 = vpop.f32.mrf.mxu0 }
 0x105   : > { %v381_v1 = vadd.f32 %v380_v0, %v308_v57  ;;  %v385_v2 = vmax.f32 %v379_v62, 0.0 }
 0x107   : > { %v386_v4 = vmax.f32 %v381_v1, 0.0  ;;  %v387_v7 = vpack.c.bf16 %v385_v2, %v383_v5 }
 0x109   : > { %v388_v6 = vpack.c.bf16 %v386_v4, %v384_v3 }
 0x10b   : > { %624 = vmatprep.mubr.bf16.mxu1 %v388_v6 }
 0x10c   : > { %625 = vmatmul.mubr.bf16.vlgmr.msra.gmra.mxu1 %v387_v7 }
 0x1cc   : > { %v626_v15 = vpop.f32.mrf.mxu1 }
 0x1cd   : > { %v627_v22 = vadd.f32 %v626_v15, %v425_v17 }
 0x1ce   : > { %v628_v18 = vpop.f32.mrf.mxu1 }
 0x1cf   : > { %v629_v20 = vadd.f32 %v628_v18, %v429_v16  ;;  %v635_v28 = vmax.f32 %v627_v22, 0.0 }
 0x1d0   : > { %v630_v19 = vpop.f32.mrf.mxu1 }
 0x1d1   : > { %v631_v21 = vadd.f32 %v630_v19, %v425_v17  ;;  %v636_v26 = vmax.f32 %v629_v20, 0.0 }
 0x1d2   : > { %v632_v23 = vpop.f32.mrf.mxu1 }
 0x1d3   : > { %v633_v24 = vadd.f32 %v632_v23, %v429_v16  ;;  %v637_v25 = vmax.f32 %v631_v21, 0.0 }
 0x1d5   : > { %v638_v27 = vmax.f32 %v633_v24, 0.0  ;;  %v639_v30 = vpack.c.bf16 %v637_v25, %v635_v28 }
 0x1d7   : > { %v640_v29 = vpack.c.bf16 %v638_v27, %v636_v26 }
 0x1d9   : > { %807 = vmatprep.mubr.bf16.mxu0 %v640_v29 }
 0x1da   : > { %808 = vmatmul.mubr.bf16.vlgmr.msra.gmra.mxu0 %v639_v30 }
 0x29a   : > { %v1011_v31 = vpop.f32.mrf.mxu0 }
 0x29c   : > { %v1012_v34 = vpop.f32.mrf.mxu0 }
 0x29d   : > { %v1013_v35 = vadd.f32 %v1012_v34, %v1011_v31 }
 0x29e   : > { %v1014_v36 = vpop.f32.mrf.mxu0 }
 0x29f   : > { %v810_v37 = vadd.f32 %v1013_v35, %v972_v33 }
 0x2a0   : > { %v1015_v38 = vpop.f32.mrf.mxu0 }
 0x2a1   : > { %v816_v39 = vmax.f32 %v810_v37, -20.0  ;;  %v1016_v40 = vadd.f32 %v1015_v38, %v1014_v36 }
 0x2a3   : > { %v818_v41 = vmin.f32 %v816_v39, 2.0  ;;  %v813_v42 = vadd.f32 %v1016_v40, %v972_v33 }
 0x2a5   : > { %v820_v43 = vsel %vm288_vm4, %v818_v41, %v810_v37  ;;  %v817_v44 = vmax.f32 %v813_v42, -20.0 }
 0x2a6   : > { %822 = vst [vmem:[%s275_s16] sm:$0xff] %v820_v43 }
 0x2a7   : > { %v819_v45 = vmin.f32 %v817_v44, 2.0 }
 0x2a9   : > { %v821_v46 = vsel %vm288_vm4, %v819_v45, %v813_v42 }
 0x2aa   : > { %823 = vst [vmem:[%s275_s16 + $0x8] sm:$0xff] %v821_v46 }
 0x2ab   : > { %1219 = shalt.err (!%p1216_p3)
}
 0x2ac   : > { %s1220_s9 = scalar_lea.hbm %s1442_s26, 256  ;;  %s1224_s14 = scalar_lea.hbm %s1490_s6, 1024 }
 0x2ad   : > { %p1221_p2 = scmp.ne.s32.totalorder %s1442_s26, %s1220_s9  ;;  %p1225_p6 = scmp.lt.s32.totalorder %s1442_s26, %s1490_s6 }
 0x2ae   : > { %p1226_p9 = scmp.lt.s32.totalorder %s1224_s14, %s1220_s9 }
 0x2af   : > { %p1222_p4 = pnand %p1221_p2, %p1359_p5 }
 0x2b0   : > { %p1227_p12 = por %p1226_p9, %p1225_p6 }
 0x2b1   : > { %p1223_p13 = pneg %p1222_p4 }
 0x2b3   : > { %p1228_p10 = pnand %p1227_p12, %p1223_p13 }
 0x2b5   : > { %1231 = shalt.err (!%p1228_p10)
}
 0x2b6   : > { %s1284_s18 = smov 128   ;;  %s1285_s19 = smov 8  }
 0x2b7   : > { %1025 = dma.vmem_to_hbm [thread:$0]  (%p1359_p5), %s1437_s17, 256, %s1442_s26, %s1444_s28, %s1284_s18, %s1284_s18, %s1285_s19  }
 0x2b8 PF: > { %p1042_p7 = scmp.ge.s32.totalorder %s1274_s24, 2  ;;  %s853_s20 = sand.u32 1, %s1262_s21  }
 0x2b9   : > { %p1500_p8 = scmp.ne.s32.totalorder %s1493_s8, 0  ;;  %s854_s29 = scalar_lea.sflag [#allocation4], %s853_s20 }
 0x2bb   : > { %p1035_p11 = pnand %p1042_p7, %p1500_p8 }
 0x2bd   : > { %p1036_p0 = pneg %p1035_p11 }
 0x2bf   : > { %1257 = dma.done.wait (%p1036_p0), %s854_s29, 256  }
 0x2c0   : > { %1259 = vsyncadd (%p1036_p0), %s854_s29, 4294967040  ;;  %p18_p1 = scmp.ge.s32.totalorder %s1346_s27, 6   ;;  %s1501_s21 = smov %s1266_s22 }
 0x2c1   : > { %s1502_s22 = smov %s1270_s23  ;;  %s1503_s23 = smov %s1357_s30 }
 0x2c2   : > { %s1504_s24 = smov %s1346_s27  ;;  %20 = sbr.rel (!%p18_p1) target bundleno = 5 (0x5), region = 89 }
 0x2c7   :  { %859 = vsyncpa [#allocation3], 1 }
 0x2c8   :  { %861 = vsyncpa [#allocation3 + $0x1], 1 }
 0x2c9   :  { %862 = vsyncpa [#allocation6], 1 }
 0x2ca   :  { %863 = vsyncpa [#allocation4], 1 }
 0x2cb   :  { %865 = vsyncpa [#allocation4 + $0x1], 1 }

</bundles_post_ra>
